<compile_context>
chip_gen: v7x
topology: tpu7x:2x2x1
jax: 0.10.0
libtpu: 0.0.40
codegen_flags: <defaults>
</compile_context>

<pallas_src>
import jax
import jax.numpy as jnp
from jax.experimental import pallas as pl
from jax.experimental.pallas import tpu as pltpu


def _round_up(n: int, m: int) -> int:
    return ((n + m - 1) // m) * m


def _ffn_kernel(x_ref, w1_ref, b1_ref, w2_ref, b2_ref, o_ref):
    # x arrives f32; cast to the MXU compute dtype in-kernel (VPU work that
    # hides under the matmuls).  fp32 accumulation on both dots.
    x = x_ref[...].astype(w1_ref.dtype)
    h = jnp.dot(x, w1_ref[...], preferred_element_type=jnp.float32)
    # Bias + ReLU in b1's dtype (bf16 on v6e/v7x -> packed VALU, fuses the
    # downcast needed for the second MXU pass; f32 on v5e).
    h = h.astype(b1_ref.dtype)
    h = jnp.maximum(h + b1_ref[...], 0.0)
    y = jnp.dot(h.astype(w2_ref.dtype), w2_ref[...],
                preferred_element_type=jnp.float32)
    o = o_ref.shape[-1]                      # true output width (<= padded N)
    o_ref[...] = (y[:, :o] + b2_ref[...]).astype(o_ref.dtype)


def prepare_ffn_params(w1, b1, w2, b2, *,
                       compute_dtype=jnp.bfloat16,
                       hidden_dtype=jnp.bfloat16):
    """One-time weight prep (hoisted out of the per-call hot path).

    w1: (E, H), b1: (H,), w2: (H, O), b2: (O,).
    On v5e pass hidden_dtype=jnp.float32 (no bf16 VPU).
    """
    E, H = w1.shape
    O = w2.shape[1]
    O_pad = _round_up(O, 128)                # lane-dense N for the second MXU pass
    return {
        "w1": w1.astype(compute_dtype),                                   # (E, H)
        "b1": b1.reshape(1, H).astype(hidden_dtype),                      # (1, H)
        "w2": jnp.pad(w2, ((0, 0), (0, O_pad - O))).astype(compute_dtype),  # (H, O_pad)
        "b2": b2.reshape(1, O).astype(jnp.float32),                       # (1, O)
        "dims": (E, H, O, O_pad),
    }


def b1e_seq_pred_ffn(x, params):
    """x: (B, 1, E) or (B, E) float32.  Returns (B, O) float32."""
    E, H, O, O_pad = params["dims"]

    # mirror torch's x.squeeze() for the (B, 1, E) layout, shape-stably
    # (torch's axis-less squeeze would also drop a size-1 batch dim; axis=1 is
    # the sane, shape-stable reading of the module).
    x2d = jnp.squeeze(x, axis=1) if x.ndim == 3 else x
    B = x2d.shape[0]
    assert x2d.shape[1] == E, (x2d.shape, E)

    # ---- batch tiling -------------------------------------------------------
    B_pad = _round_up(B, 8)
    if B_pad <= 512:
        tm = B_pad                            # whole batch in one block
    else:
        # >= 2 grid steps so v7x's two TensorCores both get work; cap at 1024.
        tm = min(_round_up(-(-B_pad // 2), 8), 1024)
    B_pad = _round_up(B_pad, tm)
    # pad only; keep f32, cast happens in-kernel
    x_p = x2d if B_pad == B else jnp.pad(x2d, ((0, B_pad - B), (0, 0)))

    grid = (B_pad // tm,)

    # ---- compiler params: raise scoped VMEM only when actually needed ------
    vmem_est = (2 * tm * E * x_p.dtype.itemsize            # x tiles (double buffered)
                + 2 * E * H * params["w1"].dtype.itemsize  # W1 buffers
                + 2 * H * O_pad * params["w2"].dtype.itemsize
                + 2 * tm * O * 4                           # output tiles
                + 2 * tm * H * 4)                          # hidden intermediates
    cp_kwargs = {"dimension_semantics": ("parallel",)}
    if vmem_est > (24 << 20):
        cp_kwargs["vmem_limit_bytes"] = min(int(vmem_est * 1.25), 100 << 20)

    out = pl.pallas_call(
        _ffn_kernel,
        out_shape=jax.ShapeDtypeStruct((B_pad, O), jnp.float32),
        grid_spec=pltpu.PrefetchScalarGridSpec(
            num_scalar_prefetch=0,
            grid=grid,
            in_specs=[
                pl.BlockSpec((tm, E), lambda i: (i, 0)),      # x tile (streams)
                pl.BlockSpec((E, H), lambda i: (0, 0)),       # W1 (resident)
                pl.BlockSpec((1, H), lambda i: (0, 0)),       # b1
                pl.BlockSpec((H, O_pad), lambda i: (0, 0)),   # W2 (lane-padded)
                pl.BlockSpec((1, O), lambda i: (0, 0)),       # b2 (true O)
            ],
            out_specs=pl.BlockSpec((tm, O), lambda i: (i, 0)),  # true-O output
        ),
        compiler_params=pltpu.CompilerParams(**cp_kwargs),
    )(x_p, params["w1"], params["b1"], params["w2"], params["b2"])

    return out if B_pad == B else out[:B]


def _reference(x, w1, b1, w2, b2,
               compute_dtype=jnp.bfloat16, hidden_dtype=jnp.bfloat16):
    # mirrors the kernel's dtype handling (bf16 operands, fp32 accumulate,
    # bias/ReLU in hidden_dtype)
    x2d = jnp.squeeze(x, axis=1) if x.ndim == 3 else x
    h = jnp.dot(x2d.astype(compute_dtype), w1.astype(compute_dtype),
                preferred_element_type=jnp.float32)
    h = jnp.maximum(h.astype(hidden_dtype) + b1.astype(hidden_dtype), 0.0)
    y = jnp.dot(h.astype(compute_dtype), w2.astype(compute_dtype),
                preferred_element_type=jnp.float32) + b2
    return y


if __name__ == "__main__":
    # Small shapes consistent with the module:
    #   batch=8, a singleton dim removed by .squeeze(), embedding_dim=256,
    #   hidden=1024 (hard-coded in the module), output_dim=16.
    B, E, H, O = 8, 256, 1024, 16

    key = jax.random.PRNGKey(0)
    k_x, k_w1, k_b1, k_w2, k_b2 = jax.random.split(key, 5)

    x = jax.random.normal(k_x, (B, 1, E), dtype=jnp.float32)
    w1 = jax.random.normal(k_w1, (E, H), dtype=jnp.float32) * (1.0 / jnp.sqrt(E))
    b1 = jax.random.normal(k_b1, (H,), dtype=jnp.float32) * 0.01
    w2 = jax.random.normal(k_w2, (H, O), dtype=jnp.float32) * (1.0 / jnp.sqrt(H))
    b2 = jax.random.normal(k_b2, (O,), dtype=jnp.float32) * 0.01

    # one-time weight prep (hoisted out of the hot path)
    params = prepare_ffn_params(w1, b1, w2, b2)

    out = b1e_seq_pred_ffn(x, params)
    out = jax.block_until_ready(out)

    ref = _reference(x, w1, b1, w2, b2)
    assert out.shape == (B, O), out.shape
    assert jnp.allclose(out, ref, atol=2e-2, rtol=2e-2), "mismatch vs reference"

    print("KERNEL_OK")
</pallas_src>

<mosaic_0001>
module attributes {stable_mosaic.version = 11 : i64} {
  func.func @_ffn_kernel(%arg0: i32, %arg1: memref<8x256xf32, #tpu.memory_space<vmem>>, %arg2: memref<256x1024xbf16, #tpu.memory_space<vmem>>, %arg3: memref<1x1024xbf16, #tpu.memory_space<vmem>>, %arg4: memref<1024x128xbf16, #tpu.memory_space<vmem>>, %arg5: memref<1x16xf32, #tpu.memory_space<vmem>>, %arg6: memref<8x16xf32, #tpu.memory_space<vmem>>) attributes {dimension_semantics = [#tpu.dimension_semantics<parallel>], iteration_bounds = array<i64: 1>, scalar_prefetch = 0 : i64, scratch_operands = 0 : i64, tpu.core_type = #tpu.core_type<tc>, window_params = [{transform_indices = @transform_0, window_bounds = array<i64: 8, 256>}, {pipeline_mode = #tpu.pipeline_mode<synchronous>, transform_indices = @transform_1, window_bounds = array<i64: 256, 1024>}, {pipeline_mode = #tpu.pipeline_mode<synchronous>, transform_indices = @transform_2, window_bounds = array<i64: 1, 1024>}, {pipeline_mode = #tpu.pipeline_mode<synchronous>, transform_indices = @transform_3, window_bounds = array<i64: 1024, 128>}, {pipeline_mode = #tpu.pipeline_mode<synchronous>, transform_indices = @transform_4, window_bounds = array<i64: 1, 16>}, {transform_indices = @transform_5, window_bounds = array<i64: 8, 16>}]} {
    %c0 = arith.constant 0 : index
    %c0_0 = arith.constant 0 : index
    %0 = vector.load %arg1[%c0, %c0_0] : memref<8x256xf32, #tpu.memory_space<vmem>>, vector<8x256xf32>
    %1 = arith.truncf %0 : vector<8x256xf32> to vector<8x256xbf16>
    %c0_1 = arith.constant 0 : index
    %c0_2 = arith.constant 0 : index
    %2 = vector.load %arg2[%c0_1, %c0_2] : memref<256x1024xbf16, #tpu.memory_space<vmem>>, vector<256x1024xbf16>
    %cst = arith.constant dense<0.000000e+00> : vector<8x1024xf32>
    %3 = tpu.matmul %1, %2, %cst {dimension_numbers = #tpu.dot_dimension_numbers<[1], [0], [0], [1], [0, 0, 1, 1], [], []>} : vector<8x256xbf16>, vector<256x1024xbf16>, vector<8x1024xf32> -> vector<8x1024xf32>
    %4 = arith.truncf %3 : vector<8x1024xf32> to vector<8x1024xbf16>
    %c0_3 = arith.constant 0 : index
    %c0_4 = arith.constant 0 : index
    %5 = vector.load %arg3[%c0_3, %c0_4] : memref<1x1024xbf16, #tpu.memory_space<vmem>>, vector<1x1024xbf16>
    %6 = vector.broadcast %5 : vector<1x1024xbf16> to vector<8x1024xbf16>
    %7 = arith.addf %4, %6 : vector<8x1024xbf16>
    %cst_5 = arith.constant 0.000000e+00 : bf16
    %8 = vector.broadcast %cst_5 : bf16 to vector<8x1024xbf16>
    %9 = arith.maximumf %7, %8 : vector<8x1024xbf16>
    %c0_6 = arith.constant 0 : index
    %c0_7 = arith.constant 0 : index
    %10 = vector.load %arg4[%c0_6, %c0_7] : memref<1024x128xbf16, #tpu.memory_space<vmem>>, vector<1024x128xbf16>
    %cst_8 = arith.constant dense<0.000000e+00> : vector<8x128xf32>
    %11 = tpu.matmul %9, %10, %cst_8 {dimension_numbers = #tpu.dot_dimension_numbers<[1], [0], [0], [1], [0, 0, 1, 1], [], []>} : vector<8x1024xbf16>, vector<1024x128xbf16>, vector<8x128xf32> -> vector<8x128xf32>
    %12 = vector.extract_strided_slice %11 {offsets = [0, 0], sizes = [8, 16], strides = [1, 1]} : vector<8x128xf32> to vector<8x16xf32>
    %c0_9 = arith.constant 0 : index
    %c0_10 = arith.constant 0 : index
    %13 = vector.load %arg5[%c0_9, %c0_10] : memref<1x16xf32, #tpu.memory_space<vmem>>, vector<1x16xf32>
    %14 = vector.broadcast %13 : vector<1x16xf32> to vector<8x16xf32>
    %15 = arith.addf %12, %14 : vector<8x16xf32>
    %c0_11 = arith.constant 0 : index
    %c0_12 = arith.constant 0 : index
    %16 = vector.load %arg6[%c0_11, %c0_12] : memref<8x16xf32, #tpu.memory_space<vmem>>, vector<8x16xf32>
    tpu.vector_store %arg6[%c0_11, %c0_12], %15 {strides = array<i32>} : memref<8x16xf32, #tpu.memory_space<vmem>>, vector<8x16xf32>,
    return
  }
  func.func @transform_0(%arg0: i32) -> (i32, i32) {
    %c0_i32 = arith.constant 0 : i32
    %c0_i32_0 = arith.constant 0 : i32
    return %arg0, %c0_i32 : i32, i32
  }
  func.func @transform_1(%arg0: i32) -> (i32, i32) {
    %c0_i32 = arith.constant 0 : i32
    %c0_i32_0 = arith.constant 0 : i32
    %c0_i32_1 = arith.constant 0 : i32
    return %c0_i32, %c0_i32_0 : i32, i32
  }
  func.func @transform_2(%arg0: i32) -> (i32, i32) {
    %c0_i32 = arith.constant 0 : i32
    %c0_i32_0 = arith.constant 0 : i32
    %c0_i32_1 = arith.constant 0 : i32
    return %c0_i32, %c0_i32_0 : i32, i32
  }
  func.func @transform_3(%arg0: i32) -> (i32, i32) {
    %c0_i32 = arith.constant 0 : i32
    %c0_i32_0 = arith.constant 0 : i32
    %c0_i32_1 = arith.constant 0 : i32
    return %c0_i32, %c0_i32_0 : i32, i32
  }
  func.func @transform_4(%arg0: i32) -> (i32, i32) {
    %c0_i32 = arith.constant 0 : i32
    %c0_i32_0 = arith.constant 0 : i32
    %c0_i32_1 = arith.constant 0 : i32
    return %c0_i32, %c0_i32_0 : i32, i32
  }
  func.func @transform_5(%arg0: i32) -> (i32, i32) {
    %c0_i32 = arith.constant 0 : i32
    %c0_i32_0 = arith.constant 0 : i32
    return %arg0, %c0_i32 : i32, i32
  }
}

</mosaic_0001>

<bundles_post_ra>
// kernel: tpu_custom_call.1
= control target key start
LH: loop header
LB: loop body
LE: loop exit
PB: predicated region body
PF: predicated region fallthrough
CT: control target
= control target key end

     0   :  { %10 = vsyncpa [#allocation3], 0  ;;  %s2461_s0 = inlined_call_operand.hbm [shape: f32[8,256], index: 0, kind: input, shape index: {}]   ;;  %s2462_s1 = inlined_call_operand.hbm [shape: bf16[256,1024], index: 1, kind: input, shape index: {}]   ;;  %s2463_s2 = inlined_call_operand.hbm [shape: bf16[1,1024], index: 2, kind: input, shape index: {}]   ;;  %s2464_s3 = inlined_call_operand.hbm [shape: bf16[1024,128], index: 3, kind: input, shape index: {}]   ;;  %s2465_s4 = inlined_call_operand.vmem [shape: f32[1,16], index: 4, kind: input, shape index: {}]   ;;  %s2466_s5 = inlined_call_operand.hbm [shape: f32[8,16], index: 5, kind: output, shape index: {}]  }
   0x1   :  { %11 = vsyncpa [#allocation6], 0 }
   0x2   :  { %12 = vsyncpa [#allocation9], 0 }
   0x3   :  { %13 = vsyncpa [#allocation4], 0  ;;  %s2314_s18 = smov [#allocation5]   ;;  %s2196_s22 = scalar_lea.hbm %s2462_s1, 16384 }
   0x4   :  { %s29_s19 = sshll.u32 %s2314_s18, 4  ;;  %p2197_p0 = scmp.ne.s32.totalorder %s2462_s1, %s2196_s22  ;;  %s30_s19 = int_to_ptr.vmem [resolvable:$true] %s29_s19 }
   0x5   :  { %p2200_p1 = scmp.lt.u32.totalorder %s2196_s22, %s2462_s1 }
   0x7   :  { %p2202_p2 = pnand %p2200_p1, %p2197_p0 }
   0x9   :  { %2205 = shalt.err (!%p2202_p2)
}
   0xa   :  { %s2206_s27 = scalar_lea.vmem %s30_s19, 16384  ;;  %p2211_p4 = scmp.lt.s32.totalorder %s30_s19, %s30_s19 }
   0xb   :  { %p2207_p3 = scmp.ne.s32.totalorder %s30_s19, %s2206_s27  ;;  %p2212_p5 = scmp.lt.s32.totalorder %s2206_s27, %s2206_s27 }
   0xd   :  { %p2213_p6 = por %p2212_p5, %p2211_p4 }
   0xf   :  { %p2214_p7 = pnand %p2213_p6, %p2207_p3 }
  0x11   :  { %2217 = shalt.err (!%p2214_p7)
}
  0x12   :  { %s2315_s28 = smov 512   ;;  %s2316_s29 = smov 32  }
  0x13   :  { %35 = dma.hbm_to_vmem [thread:$0]  %s2462_s1, 16384, %s30_s19, [#allocation6], %s2315_s28, %s2315_s28, %s2316_s29  }
  0x14   :  { %s2317_s7 = smov [#allocation2]   ;;  %s2318_s9 = smov [#allocation7]  }
  0x15   :  { %s20_s8 = sshll.u32 %s2317_s7, 4  ;;  %s42_s10 = sshll.u32 %s2318_s9, 4  ;;  %s21_s8 = int_to_ptr.vmem [resolvable:$true] %s20_s8  ;;  %s43_s10 = int_to_ptr.vmem [resolvable:$true] %s42_s10 }
  0x16   :  { %s2218_s13 = scalar_lea.hbm %s2461_s0, 256 }
  0x17   :  { %p2219_p8 = scmp.ne.s32.totalorder %s2461_s0, %s2218_s13  ;;  %p2222_p9 = scmp.lt.u32.totalorder %s2218_s13, %s2461_s0 }
  0x19   :  { %p2224_p10 = pnand %p2222_p9, %p2219_p8 }
  0x1b   :  { %2227 = shalt.err (!%p2224_p10)
}
  0x1c   :  { %s2228_s1 = scalar_lea.vmem %s21_s8, 256  ;;  %p2233_p12 = scmp.lt.s32.totalorder %s21_s8, %s21_s8 }
  0x1d   :  { %p2229_p11 = scmp.ne.s32.totalorder %s21_s8, %s2228_s1  ;;  %p2234_p13 = scmp.lt.s32.totalorder %s2228_s1, %s2228_s1 }
  0x1f   :  { %p2235_p0 = por %p2234_p13, %p2233_p12 }
  0x21   :  { %p2236_p1 = pnand %p2235_p0, %p2229_p11 }
  0x23   :  { %2239 = shalt.err (!%p2236_p1)
}
  0x24   :  { %23 = dma.hbm_to_vmem [thread:$0]  %s2461_s0, 256, %s21_s8, [#allocation3]  }
  0x25   :  { %s2240_s22 = scalar_lea.hbm %s2463_s2, 128 }
  0x26   :  { %p2241_p2 = scmp.ne.s32.totalorder %s2463_s2, %s2240_s22  ;;  %p2244_p3 = scmp.lt.u32.totalorder %s2240_s22, %s2463_s2 }
  0x28   :  { %p2246_p4 = pnand %p2244_p3, %p2241_p2 }
  0x2a   :  { %2249 = shalt.err (!%p2246_p4)
}
  0x2b   :  { %s2250_s27 = scalar_lea.vmem %s43_s10, 128  ;;  %p2255_p6 = scmp.lt.s32.totalorder %s43_s10, %s43_s10 }
  0x2c   :  { %p2251_p5 = scmp.ne.s32.totalorder %s43_s10, %s2250_s27  ;;  %p2256_p7 = scmp.lt.s32.totalorder %s2250_s27, %s2250_s27 }
  0x2e   :  { %p2257_p8 = por %p2256_p7, %p2255_p6 }
  0x30   :  { %p2258_p9 = pnand %p2257_p8, %p2251_p5 }
  0x32   :  { %2261 = shalt.err (!%p2258_p9)
}
  0x33   :  { %45 = dma.hbm_to_vmem [thread:$0]  %s2463_s2, 128, %s43_s10, [#allocation6]  }
  0x34   :  { %s2319_s29 = smov [#allocation8]   ;;  %s2262_s8 = scalar_lea.hbm %s2464_s3, 8192 }
  0x35   :  { %s51_s30 = sshll.u32 %s2319_s29, 4  ;;  %p2263_p10 = scmp.ne.s32.totalorder %s2464_s3, %s2262_s8  ;;  %s52_s30 = int_to_ptr.vmem [resolvable:$true] %s51_s30 }
  0x36   :  { %p2266_p11 = scmp.lt.u32.totalorder %s2262_s8, %s2464_s3 }
  0x38   :  { %p2268_p12 = pnand %p2266_p11, %p2263_p10 }
  0x3a   :  { %2271 = shalt.err (!%p2268_p12)
}
  0x3b   :  { %s2272_s14 = scalar_lea.vmem %s52_s30, 8192  ;;  %p2277_p0 = scmp.lt.s32.totalorder %s52_s30, %s52_s30 }
  0x3c   :  { %p2273_p13 = scmp.ne.s32.totalorder %s52_s30, %s2272_s14  ;;  %p2278_p1 = scmp.lt.s32.totalorder %s2272_s14, %s2272_s14 }
  0x3e   :  { %p2279_p2 = por %p2278_p1, %p2277_p0 }
  0x40   :  { %p2280_p3 = pnand %p2279_p2, %p2273_p13 }
  0x42   :  { %2283 = shalt.err (!%p2280_p3)
}
  0x43   :  { %s2320_s2 = smov 64   ;;  %s2321_s10 = smov 4  }
  0x44   :  { %57 = dma.hbm_to_vmem [thread:$0]  %s2464_s3, 8192, %s52_s30, [#allocation9], %s2320_s2, %s2320_s2, %s2321_s10  }
  0x45   :  { %2306 = dma.done.wait [#allocation3], 256  }
  0x46   :  { %2307 = vsyncadd [#allocation3], 4294967040 }
  0x47   :  { %2308 = dma.done.wait [#allocation6], 16512  }
  0x48   :  { %2309 = vsyncadd [#allocation6], 4294950784 }
  0x49   :  { %2310 = dma.done.wait [#allocation9], 8192  }
  0x4a   :  { %2311 = vsyncadd [#allocation9], 4294959104  ;;  %v77_v0 = vld [vmem:[#allocation5] sm:$0xff]  ;;  %v78_v2 = vld [vmem:[#allocation5 + $0x8] sm:$0xff]  ;;  %s2324_s1 = smov [#allocation10]   ;;  %vm1820_vm0 = vcmask 130048  }
  0x4b   :  { %v81_v1 = vld [vmem:[#allocation5 + $0x20] sm:$0xff]  ;;  %v82_v4 = vld [vmem:[#allocation5 + $0x28] sm:$0xff]  ;;  %v74_v53 = vld [vmem:[#allocation2 + $0x8] sm:$0xff]  ;;  %s1828_s18 = sshll.u32 %s2324_s1, 4  ;;  %s1829_s18 = int_to_ptr.vmem [resolvable:$true] %s1828_s18 }
  0x4c   :  { %v1840_v3 = vcombine.high %v77_v0, %v81_v1  ;;  %v1839_v5 = vcombine.low %v77_v0, %v81_v1  ;;  %v85_v6 = vld [vmem:[#allocation5 + $0x40] sm:$0xff]  ;;  %v1842_v8 = vcombine.high %v78_v2, %v82_v4  ;;  %v1841_v9 = vcombine.low %v78_v2, %v82_v4  ;;  %v86_v11 = vld [vmem:[#allocation5 + $0x48] sm:$0xff]  ;;  %s2284_s19 = scalar_lea.vmem %s1829_s18, 128  ;;  %p2289_p5 = scmp.lt.s32.totalorder %s1829_s18, %s1829_s18 }
  0x4d   :  { %v89_v7 = vld [vmem:[#allocation5 + $0x60] sm:$0xff]  ;;  %v90_v12 = vld [vmem:[#allocation5 + $0x68] sm:$0xff]  ;;  %v2403_v57 = vpack.c.bf16 %v74_v53, %v74_v53  ;;  %p2285_p4 = scmp.ne.s32.totalorder %s1829_s18, %s2284_s19  ;;  %p2290_p6 = scmp.lt.s32.totalorder %s2284_s19, %s2284_s19 }
  0x4e   :  { %v1848_v10 = vcombine.high %v85_v6, %v89_v7  ;;  %v93_v13 = vld [vmem:[#allocation5 + $0x80] sm:$0xff]  ;;  %845 = vmatprep.subr.bf16.mxu0 %v1840_v3  ;;  %v1850_v14 = vcombine.high %v86_v11, %v90_v12  ;;  %v94_v16 = vld [vmem:[#allocation5 + $0x88] sm:$0xff]  ;;  %886 = vmatprep.subr.bf16.mxu1 %v1842_v8  ;;  %v1847_v18 = vcombine.low %v85_v6, %v89_v7 }
  0x4f   :  { %v97_v15 = vld [vmem:[#allocation5 + $0xa0] sm:$0xff]  ;;  %v98_v17 = vld [vmem:[#allocation5 + $0xa8] sm:$0xff]  ;;  %846 = vmatpush1.bf16.msra.mxu0 %v1839_v5  ;;  %887 = vmatpush1.bf16.msra.mxu1 %v1841_v9  ;;  %v1849_v19 = vcombine.low %v86_v11, %v90_v12  ;;  %p2291_p7 = por %p2290_p6, %p2289_p5 }
  0x50   :  { %847 = vmatprep.subr.bf16.mxu0 %v1848_v10  ;;  %v1856_v20 = vcombine.high %v93_v13, %v97_v15  ;;  %888 = vmatprep.subr.bf16.mxu1 %v1850_v14  ;;  %v1858_v21 = vcombine.high %v94_v16, %v98_v17  ;;  %v101_v22 = vld [vmem:[#allocation5 + $0xc0] sm:$0xff]  ;;  %v102_v24 = vld [vmem:[#allocation5 + $0xc8] sm:$0xff]  ;;  %v1855_v26 = vcombine.low %v93_v13, %v97_v15 }
  0x51   :  { %v105_v23 = vld [vmem:[#allocation5 + $0xe0] sm:$0xff]  ;;  %v106_v25 = vld [vmem:[#allocation5 + $0xe8] sm:$0xff]  ;;  %v1857_v27 = vcombine.low %v94_v16, %v98_v17  ;;  %877 = vmatprep.mubr.bf16.mxu0 %v2403_v57  ;;  %918 = vmatprep.mubr.bf16.mxu1 %v2403_v57  ;;  %p2292_p8 = pnand %p2291_p7, %p2285_p4 }
  0x52   :  { %v1864_v28 = vcombine.high %v101_v22, %v105_v23  ;;  %v1866_v29 = vcombine.high %v102_v24, %v106_v25  ;;  %v109_v30 = vld [vmem:[#allocation5 + $0x100] sm:$0xff]  ;;  %v110_v32 = vld [vmem:[#allocation5 + $0x108] sm:$0xff]  ;;  %v1863_v34 = vcombine.low %v101_v22, %v105_v23  ;;  %v1865_v35 = vcombine.low %v102_v24, %v106_v25 }
  0x53   :  { %848 = vmatpush1.bf16.msra.mxu0 %v1847_v18  ;;  %889 = vmatpush1.bf16.msra.mxu1 %v1849_v19  ;;  %v113_v31 = vld [vmem:[#allocation5 + $0x120] sm:$0xff]  ;;  %v114_v33 = vld [vmem:[#allocation5 + $0x128] sm:$0xff] }
  0x54   :  { %849 = vmatprep.subr.bf16.mxu0 %v1856_v20  ;;  %890 = vmatprep.subr.bf16.mxu1 %v1858_v21  ;;  %v1872_v36 = vcombine.high %v109_v30, %v113_v31  ;;  %v1874_v37 = vcombine.high %v110_v32, %v114_v33  ;;  %v117_v38 = vld [vmem:[#allocation5 + $0x140] sm:$0xff]  ;;  %v118_v40 = vld [vmem:[#allocation5 + $0x148] sm:$0xff]  ;;  %v1871_v42 = vcombine.low %v109_v30, %v113_v31 }
  0x55   :  { %v121_v39 = vld [vmem:[#allocation5 + $0x160] sm:$0xff]  ;;  %v122_v41 = vld [vmem:[#allocation5 + $0x168] sm:$0xff]  ;;  %v1873_v43 = vcombine.low %v110_v32, %v114_v33 }
  0x56   :  { %v1880_v44 = vcombine.high %v117_v38, %v121_v39  ;;  %v1882_v45 = vcombine.high %v118_v40, %v122_v41  ;;  %v125_v46 = vld [vmem:[#allocation5 + $0x180] sm:$0xff]  ;;  %v126_v48 = vld [vmem:[#allocation5 + $0x188] sm:$0xff]  ;;  %v1879_v50 = vcombine.low %v117_v38, %v121_v39  ;;  %v1881_v51 = vcombine.low %v118_v40, %v122_v41 }
  0x57   :  { %850 = vmatpush1.bf16.msra.mxu0 %v1855_v26  ;;  %891 = vmatpush1.bf16.msra.mxu1 %v1857_v27  ;;  %v129_v47 = vld [vmem:[#allocation5 + $0x1a0] sm:$0xff]  ;;  %v130_v49 = vld [vmem:[#allocation5 + $0x1a8] sm:$0xff] }
  0x58   :  { %851 = vmatprep.subr.bf16.mxu0 %v1864_v28  ;;  %892 = vmatprep.subr.bf16.mxu1 %v1866_v29  ;;  %v1888_v52 = vcombine.high %v125_v46, %v129_v47  ;;  %v1890_v54 = vcombine.high %v126_v48, %v130_v49  ;;  %v133_v55 = vld [vmem:[#allocation5 + $0x1c0] sm:$0xff]  ;;  %v134_v58 = vld [vmem:[#allocation5 + $0x1c8] sm:$0xff]  ;;  %v1887_v60 = vcombine.low %v125_v46, %v129_v47 }
  0x59   :  { %v137_v56 = vld [vmem:[#allocation5 + $0x1e0] sm:$0xff]  ;;  %v138_v59 = vld [vmem:[#allocation5 + $0x1e8] sm:$0xff]  ;;  %v1889_v61 = vcombine.low %v126_v48, %v130_v49 }
  0x5a   :  { %v1896_v62 = vcombine.high %v133_v55, %v137_v56  ;;  %v1898_v63 = vcombine.high %v134_v58, %v138_v59  ;;  %v141_v0 = vld [vmem:[#allocation5 + $0x200] sm:$0xff]  ;;  %v142_v2 = vld [vmem:[#allocation5 + $0x208] sm:$0xff]  ;;  %v1895_v4 = vcombine.low %v133_v55, %v137_v56  ;;  %v1897_v5 = vcombine.low %v134_v58, %v138_v59 }
  0x5b   :  { %852 = vmatpush1.bf16.msra.mxu0 %v1863_v34  ;;  %893 = vmatpush1.bf16.msra.mxu1 %v1865_v35  ;;  %v145_v1 = vld [vmem:[#allocation5 + $0x220] sm:$0xff]  ;;  %v146_v3 = vld [vmem:[#allocation5 + $0x228] sm:$0xff] }
  0x5c   :  { %853 = vmatprep.subr.bf16.mxu0 %v1872_v36  ;;  %894 = vmatprep.subr.bf16.mxu1 %v1874_v37  ;;  %v1904_v6 = vcombine.high %v141_v0, %v145_v1  ;;  %v1906_v7 = vcombine.high %v142_v2, %v146_v3  ;;  %v149_v8 = vld [vmem:[#allocation5 + $0x240] sm:$0xff]  ;;  %v150_v10 = vld [vmem:[#allocation5 + $0x248] sm:$0xff]  ;;  %v1903_v12 = vcombine.low %v141_v0, %v145_v1  ;;  %v83_v1 = vld [vmem:[#allocation5 + $0x30] sm:$0xff] }
  0x5d   :  { %v153_v9 = vld [vmem:[#allocation5 + $0x260] sm:$0xff]  ;;  %v154_v11 = vld [vmem:[#allocation5 + $0x268] sm:$0xff]  ;;  %v1905_v13 = vcombine.low %v142_v2, %v146_v3  ;;  %v73_v3 = vld [vmem:[#allocation2] sm:$0xff] }
  0x5e   :  { %v1912_v14 = vcombine.high %v149_v8, %v153_v9  ;;  %v1914_v15 = vcombine.high %v150_v10, %v154_v11  ;;  %v157_v16 = vld [vmem:[#allocation5 + $0x280] sm:$0xff]  ;;  %v158_v18 = vld [vmem:[#allocation5 + $0x288] sm:$0xff]  ;;  %v1911_v20 = vcombine.low %v149_v8, %v153_v9  ;;  %v1913_v21 = vcombine.low %v150_v10, %v154_v11  ;;  %v91_v10 = vld [vmem:[#allocation5 + $0x70] sm:$0xff] }
  0x5f   :  { %854 = vmatpush1.bf16.msra.mxu0 %v1871_v42  ;;  %895 = vmatpush1.bf16.msra.mxu1 %v1873_v43  ;;  %v161_v17 = vld [vmem:[#allocation5 + $0x2a0] sm:$0xff]  ;;  %v162_v19 = vld [vmem:[#allocation5 + $0x2a8] sm:$0xff] }
  0x60   :  { %855 = vmatprep.subr.bf16.mxu0 %v1880_v44  ;;  %896 = vmatprep.subr.bf16.mxu1 %v1882_v45  ;;  %v1920_v22 = vcombine.high %v157_v16, %v161_v17  ;;  %v1922_v23 = vcombine.high %v158_v18, %v162_v19  ;;  %v165_v24 = vld [vmem:[#allocation5 + $0x2c0] sm:$0xff]  ;;  %v166_v26 = vld [vmem:[#allocation5 + $0x2c8] sm:$0xff]  ;;  %v1919_v28 = vcombine.low %v157_v16, %v161_v17  ;;  %v95_v16 = vld [vmem:[#allocation5 + $0x90] sm:$0xff] }
  0x61   :  { %v169_v25 = vld [vmem:[#allocation5 + $0x2e0] sm:$0xff]  ;;  %v170_v27 = vld [vmem:[#allocation5 + $0x2e8] sm:$0xff]  ;;  %v1921_v29 = vcombine.low %v158_v18, %v162_v19  ;;  %v99_v19 = vld [vmem:[#allocation5 + $0xb0] sm:$0xff] }
  0x62   :  { %v1928_v30 = vcombine.high %v165_v24, %v169_v25  ;;  %v1930_v31 = vcombine.high %v166_v26, %v170_v27  ;;  %v173_v32 = vld [vmem:[#allocation5 + $0x300] sm:$0xff]  ;;  %v174_v34 = vld [vmem:[#allocation5 + $0x308] sm:$0xff]  ;;  %v1927_v36 = vcombine.low %v165_v24, %v169_v25  ;;  %v1929_v38 = vcombine.low %v166_v26, %v170_v27  ;;  %v103_v24 = vld [vmem:[#allocation5 + $0xd0] sm:$0xff] }
  0x63   :  { %856 = vmatpush1.bf16.msra.mxu0 %v1879_v50  ;;  %897 = vmatpush1.bf16.msra.mxu1 %v1881_v51  ;;  %v177_v33 = vld [vmem:[#allocation5 + $0x320] sm:$0xff]  ;;  %v178_v35 = vld [vmem:[#allocation5 + $0x328] sm:$0xff]  ;;  %v107_v25 = vld [vmem:[#allocation5 + $0xf0] sm:$0xff]  ;;  %v1860_v27 = vcombine.high %v95_v16, %v99_v19 }
  0x64   :  { %857 = vmatprep.subr.bf16.mxu0 %v1888_v52  ;;  %898 = vmatprep.subr.bf16.mxu1 %v1890_v54  ;;  %v181_v37 = vld [vmem:[#allocation5 + $0x340] sm:$0xff]  ;;  %v1936_v39 = vcombine.high %v173_v32, %v177_v33  ;;  %v1938_v41 = vcombine.high %v174_v34, %v178_v35  ;;  %v182_v42 = vld [vmem:[#allocation5 + $0x348] sm:$0xff]  ;;  %v1935_v44 = vcombine.low %v173_v32, %v177_v33  ;;  %v111_v32 = vld [vmem:[#allocation5 + $0x110] sm:$0xff] }
  0x65   :  { %v185_v40 = vld [vmem:[#allocation5 + $0x360] sm:$0xff]  ;;  %v186_v43 = vld [vmem:[#allocation5 + $0x368] sm:$0xff]  ;;  %v1937_v46 = vcombine.low %v174_v34, %v178_v35  ;;  %v115_v33 = vld [vmem:[#allocation5 + $0x130] sm:$0xff]  ;;  %v1868_v35 = vcombine.high %v103_v24, %v107_v25 }
  0x66   :  { %v189_v45 = vld [vmem:[#allocation5 + $0x380] sm:$0xff]  ;;  %v1944_v47 = vcombine.high %v181_v37, %v185_v40  ;;  %v1946_v49 = vcombine.high %v182_v42, %v186_v43  ;;  %v190_v50 = vld [vmem:[#allocation5 + $0x388] sm:$0xff]  ;;  %v1943_v52 = vcombine.low %v181_v37, %v185_v40  ;;  %v1945_v54 = vcombine.low %v182_v42, %v186_v43  ;;  %v116_v37 = vld [vmem:[#allocation5 + $0x138] sm:$0xff] }
  0x67   :  { %858 = vmatpush1.bf16.msra.mxu0 %v1887_v60  ;;  %899 = vmatpush1.bf16.msra.mxu1 %v1889_v61  ;;  %v193_v48 = vld [vmem:[#allocation5 + $0x3a0] sm:$0xff]  ;;  %v194_v51 = vld [vmem:[#allocation5 + $0x3a8] sm:$0xff]  ;;  %v119_v40 = vld [vmem:[#allocation5 + $0x150] sm:$0xff] }
  0x68   :  { %859 = vmatprep.subr.bf16.mxu0 %v1896_v62  ;;  %900 = vmatprep.subr.bf16.mxu1 %v1898_v63  ;;  %v197_v53 = vld [vmem:[#allocation5 + $0x3c0] sm:$0xff]  ;;  %v1952_v55 = vcombine.high %v189_v45, %v193_v48  ;;  %v1954_v58 = vcombine.high %v190_v50, %v194_v51  ;;  %v198_v59 = vld [vmem:[#allocation5 + $0x3c8] sm:$0xff]  ;;  %v1951_v61 = vcombine.low %v189_v45, %v193_v48  ;;  %v79_v62 = vld [vmem:[#allocation5 + $0x10] sm:$0xff] }
  0x69   :  { %v201_v56 = vld [vmem:[#allocation5 + $0x3e0] sm:$0xff]  ;;  %v202_v60 = vld [vmem:[#allocation5 + $0x3e8] sm:$0xff]  ;;  %v1953_v63 = vcombine.low %v190_v50, %v194_v51  ;;  %v1844_v9 = vcombine.high %v79_v62, %v83_v1  ;;  %v120_v43 = vld [vmem:[#allocation5 + $0x158] sm:$0xff] }
  0x6a   :  { %v1960_v0 = vcombine.high %v197_v53, %v201_v56  ;;  %v1962_v2 = vcombine.high %v198_v59, %v202_v60  ;;  %v1961_v8 = vcombine.low %v198_v59, %v202_v60  ;;  %v131_v48 = vld [vmem:[#allocation5 + $0x1b0] sm:$0xff]  ;;  %v128_v51 = vld [vmem:[#allocation5 + $0x198] sm:$0xff] }
  0x6b   :  { %860 = vmatpush1.bf16.msra.mxu0 %v1895_v4  ;;  %901 = vmatpush1.bf16.msra.mxu1 %v1897_v5  ;;  %v80_v4 = vld [vmem:[#allocation5 + $0x18] sm:$0xff] }
  0x6c   :  { %861 = vmatprep.subr.bf16.mxu0 %v1904_v6  ;;  %902 = vmatprep.subr.bf16.mxu1 %v1906_v7  ;;  %v84_v5 = vld [vmem:[#allocation5 + $0x38] sm:$0xff]  ;;  %v1959_v6 = vcombine.low %v197_v53, %v201_v56  ;;  %v87_v7 = vld [vmem:[#allocation5 + $0x50] sm:$0xff] }
  0x6d   :  { %v1846_v11 = vcombine.high %v80_v4, %v84_v5  ;;  %v1845_v17 = vcombine.low %v80_v4, %v84_v5  ;;  %v1852_v18 = vcombine.high %v87_v7, %v91_v10  ;;  %v139_v56 = vld [vmem:[#allocation5 + $0x1f0] sm:$0xff]  ;;  %v136_v60 = vld [vmem:[#allocation5 + $0x1d8] sm:$0xff] }
  0x6e   :  { %v144_v4 = vld [vmem:[#allocation5 + $0x218] sm:$0xff] }
  0x6f   :  { %862 = vmatpush1.bf16.msra.mxu0 %v1903_v12  ;;  %903 = vmatpush1.bf16.msra.mxu1 %v1905_v13  ;;  %v88_v12 = vld [vmem:[#allocation5 + $0x58] sm:$0xff]  ;;  %v2407_v13 = vpack.c.bf16 %v73_v3, %v73_v3 }
  0x70   :  { %863 = vmatprep.subr.bf16.mxu0 %v1912_v14  ;;  %904 = vmatprep.subr.bf16.mxu1 %v1914_v15  ;;  %v92_v14 = vld [vmem:[#allocation5 + $0x78] sm:$0xff]  ;;  %v1843_v15 = vcombine.low %v79_v62, %v83_v1  ;;  %v147_v1 = vld [vmem:[#allocation5 + $0x230] sm:$0xff] }
  0x71   :  { %v1853_v26 = vcombine.low %v88_v12, %v92_v14  ;;  %v148_v5 = vld [vmem:[#allocation5 + $0x238] sm:$0xff] }
  0x73   :  { %864 = vmatpush1.bf16.msra.mxu0 %v1911_v20  ;;  %905 = vmatpush1.bf16.msra.mxu1 %v1913_v21  ;;  %v1854_v20 = vcombine.high %v88_v12, %v92_v14  ;;  %v96_v21 = vld [vmem:[#allocation5 + $0x98] sm:$0xff]  ;;  %v155_v12 = vld [vmem:[#allocation5 + $0x270] sm:$0xff] }
  0x74   :  { %865 = vmatprep.subr.bf16.mxu0 %v1920_v22  ;;  %906 = vmatprep.subr.bf16.mxu1 %v1922_v23  ;;  %v100_v22 = vld [vmem:[#allocation5 + $0xb8] sm:$0xff]  ;;  %v1851_v23 = vcombine.low %v87_v7, %v91_v10  ;;  %v1910_v10 = vcombine.high %v144_v4, %v148_v5 }
  0x75   :  { %v1861_v34 = vcombine.low %v96_v21, %v100_v22  ;;  %v152_v14 = vld [vmem:[#allocation5 + $0x258] sm:$0xff] }
  0x77   :  { %866 = vmatpush1.bf16.msra.mxu0 %v1919_v28  ;;  %907 = vmatpush1.bf16.msra.mxu1 %v1921_v29  ;;  %v104_v28 = vld [vmem:[#allocation5 + $0xd8] sm:$0xff] }
  0x78   :  { %867 = vmatprep.subr.bf16.mxu0 %v1928_v30  ;;  %908 = vmatprep.subr.bf16.mxu1 %v1930_v31  ;;  %v108_v29 = vld [vmem:[#allocation5 + $0xf8] sm:$0xff]  ;;  %v1862_v30 = vcombine.high %v96_v21, %v100_v22  ;;  %v1859_v31 = vcombine.low %v95_v16, %v99_v19  ;;  %v163_v21 = vld [vmem:[#allocation5 + $0x2b0] sm:$0xff] }
  0x79   :  { %v1869_v42 = vcombine.low %v104_v28, %v108_v29  ;;  %v160_v22 = vld [vmem:[#allocation5 + $0x298] sm:$0xff] }
  0x7b   :  { %868 = vmatpush1.bf16.msra.mxu0 %v1927_v36  ;;  %909 = vmatpush1.bf16.msra.mxu1 %v1929_v38  ;;  %v112_v36 = vld [vmem:[#allocation5 + $0x118] sm:$0xff]  ;;  %v1870_v38 = vcombine.high %v104_v28, %v108_v29  ;;  %v167_v28 = vld [vmem:[#allocation5 + $0x2d0] sm:$0xff] }
  0x7c   :  { %869 = vmatprep.subr.bf16.mxu0 %v1936_v39  ;;  %910 = vmatprep.subr.bf16.mxu1 %v1938_v41  ;;  %v1867_v39 = vcombine.low %v103_v24, %v107_v25  ;;  %v123_v41 = vld [vmem:[#allocation5 + $0x170] sm:$0xff]  ;;  %v1878_v45 = vcombine.high %v112_v36, %v116_v37 }
  0x7d   :  { %v1884_v50 = vcombine.high %v119_v40, %v123_v41  ;;  %v171_v29 = vld [vmem:[#allocation5 + $0x2f0] sm:$0xff] }
  0x7f   :  { %870 = vmatpush1.bf16.msra.mxu0 %v1935_v44  ;;  %911 = vmatpush1.bf16.msra.mxu1 %v1937_v46  ;;  %v124_v44 = vld [vmem:[#allocation5 + $0x178] sm:$0xff]  ;;  %v1875_v46 = vcombine.low %v111_v32, %v115_v33 }
  0x80   :  { %871 = vmatprep.subr.bf16.mxu0 %v1944_v47  ;;  %912 = vmatprep.subr.bf16.mxu1 %v1946_v49  ;;  %v127_v47 = vld [vmem:[#allocation5 + $0x190] sm:$0xff]  ;;  %v1877_v49 = vcombine.low %v112_v36, %v116_v37  ;;  %v1886_v53 = vcombine.high %v120_v43, %v124_v44 }
  0x81   :  { %v1892_v59 = vcombine.high %v127_v47, %v131_v48  ;;  %v175_v36 = vld [vmem:[#allocation5 + $0x310] sm:$0xff] }
  0x82   :  { %v179_v37 = vld [vmem:[#allocation5 + $0x330] sm:$0xff] }
  0x83   :  { %872 = vmatpush1.bf16.msra.mxu0 %v1943_v52  ;;  %913 = vmatpush1.bf16.msra.mxu1 %v1945_v54  ;;  %v132_v52 = vld [vmem:[#allocation5 + $0x1b8] sm:$0xff]  ;;  %v1883_v54 = vcombine.low %v119_v40, %v123_v41  ;;  %v1931_v40 = vcombine.low %v167_v28, %v171_v29 }
  0x84   :  { %873 = vmatprep.subr.bf16.mxu0 %v1952_v55  ;;  %914 = vmatprep.subr.bf16.mxu1 %v1954_v58  ;;  %v135_v55 = vld [vmem:[#allocation5 + $0x1d0] sm:$0xff]  ;;  %v1885_v58 = vcombine.low %v120_v43, %v124_v44  ;;  %v1894_v62 = vcombine.high %v128_v51, %v132_v52 }
  0x85   :  { %v1900_v3 = vcombine.high %v135_v55, %v139_v56  ;;  %v1899_v7 = vcombine.low %v135_v55, %v139_v56  ;;  %v183_v43 = vld [vmem:[#allocation5 + $0x350] sm:$0xff] }
  0x86   :  { %v187_v44 = vld [vmem:[#allocation5 + $0x370] sm:$0xff] }
  0x87   :  { %874 = vmatpush1.bf16.msra.mxu0 %v1951_v61  ;;  %915 = vmatpush1.bf16.msra.mxu1 %v1953_v63  ;;  %v140_v61 = vld [vmem:[#allocation5 + $0x1f8] sm:$0xff]  ;;  %v1891_v63 = vcombine.low %v127_v47, %v131_v48  ;;  %v1939_v47 = vcombine.low %v175_v36, %v179_v37  ;;  %v1947_v55 = vcombine.low %v183_v43, %v187_v44 }
  0x88   :  { %875 = vmatprep.subr.bf16.mxu0 %v1960_v0  ;;  %916 = vmatprep.subr.bf16.mxu1 %v1962_v2  ;;  %v143_v0 = vld [vmem:[#allocation5 + $0x210] sm:$0xff]  ;;  %v1893_v2 = vcombine.low %v128_v51, %v132_v52 }
  0x89   :  { %v1907_v16 = vcombine.low %v143_v0, %v147_v1  ;;  %v191_v51 = vld [vmem:[#allocation5 + $0x390] sm:$0xff] }
  0x8a   :  { %v195_v52 = vld [vmem:[#allocation5 + $0x3b0] sm:$0xff] }
  0x8b   :  { %876 = vmatpush1.bf16.msra.mxu0 %v1959_v6  ;;  %917 = vmatpush1.bf16.msra.mxu1 %v1961_v8  ;;  %v1902_v6 = vcombine.high %v136_v60, %v140_v61  ;;  %v1901_v8 = vcombine.low %v136_v60, %v140_v61  ;;  %v199_v60 = vld [vmem:[#allocation5 + $0x3d0] sm:$0xff] }
  0x8c   :  { %927 = vmatprep.subr.bf16.mxu0 %v1844_v9  ;;  %968 = vmatprep.subr.bf16.mxu1 %v1846_v11  ;;  %v1908_v9 = vcombine.high %v143_v0, %v147_v1  ;;  %v151_v11 = vld [vmem:[#allocation5 + $0x250] sm:$0xff]  ;;  %v1955_v0 = vcombine.low %v191_v51, %v195_v52 }
  0x8d   :  { %v1915_v24 = vcombine.low %v151_v11, %v155_v12  ;;  %v203_v61 = vld [vmem:[#allocation5 + $0x3f0] sm:$0xff] }
  0x8e   :  { %878 = vmatmul.mubr.bf16.vlgmr.msra.gmra.mrb[0].mxu0 %v2407_v13  ;;  %919 = vmatmul.mubr.bf16.vlgmr.msra.gmra.mrb[0].mxu1 %v2407_v13 }
  0x8f   :  { %928 = vmatpush1.bf16.msra.mxu0 %v1843_v15  ;;  %969 = vmatpush1.bf16.msra.mxu1 %v1845_v17  ;;  %v156_v15 = vld [vmem:[#allocation5 + $0x278] sm:$0xff]  ;;  %v1909_v17 = vcombine.low %v144_v4, %v148_v5  ;;  %v1963_v4 = vcombine.low %v199_v60, %v203_v61 }
  0x90   :  { %929 = vmatprep.subr.bf16.mxu0 %v1852_v18  ;;  %970 = vmatprep.subr.bf16.mxu1 %v1854_v20  ;;  %v1916_v18 = vcombine.high %v151_v11, %v155_v12  ;;  %v1918_v19 = vcombine.high %v152_v14, %v156_v15  ;;  %v159_v20 = vld [vmem:[#allocation5 + $0x290] sm:$0xff]  ;;  %v1917_v25 = vcombine.low %v152_v14, %v156_v15  ;;  %v2139_v15 = vld [vmem:[#allocation8 + $0x50] sm:$0xff]  }
  0x91   :  { %959 = vmatprep.mubr.bf16.mxu0 %v2403_v57  ;;  %1000 = vmatprep.mubr.bf16.mxu1 %v2403_v57  ;;  %v1876_v57 = vcombine.high %v111_v32, %v115_v33  ;;  %v1923_v32 = vcombine.low %v159_v20, %v163_v21  ;;  %v2136_v11 = vld [vmem:[#allocation8 + $0xc8] sm:$0xff]  }
  0x92   :  { %v2137_v12 = vld [vmem:[#allocation8 + $0x8] sm:$0xff]  }
  0x93   :  { %930 = vmatpush1.bf16.msra.mxu0 %v1851_v23  ;;  %971 = vmatpush1.bf16.msra.mxu1 %v1853_v26  ;;  %v164_v23 = vld [vmem:[#allocation5 + $0x2b8] sm:$0xff]  ;;  %v1924_v26 = vcombine.high %v159_v20, %v163_v21  ;;  %v2138_v14 = vld [vmem:[#allocation8 + $0x88] sm:$0xff]   ;;  %v2144_v20 = vld [vmem:[#allocation8 + $0xd8] sm:$0xff]  }
  0x94   :  { %931 = vmatprep.subr.bf16.mxu0 %v1860_v27  ;;  %972 = vmatprep.subr.bf16.mxu1 %v1862_v30  ;;  %v1926_v27 = vcombine.high %v160_v22, %v164_v23  ;;  %v168_v30 = vld [vmem:[#allocation5 + $0x2d8] sm:$0xff]  ;;  %v1925_v33 = vcombine.low %v160_v22, %v164_v23  ;;  %v2145_v21 = vld [vmem:[#allocation8 + $0x18] sm:$0xff]   ;;  %v2147_v22 = vld [vmem:[#allocation8 + $0x60] sm:$0xff]  }
  0x95   :  { %v2148_v23 = vld [vmem:[#allocation8 + $0xe0] sm:$0xff]  }
  0x97   :  { %932 = vmatpush1.bf16.msra.mxu0 %v1859_v31  ;;  %973 = vmatpush1.bf16.msra.mxu1 %v1861_v34  ;;  %v172_v31 = vld [vmem:[#allocation5 + $0x2f8] sm:$0xff]  ;;  %v1932_v34 = vcombine.high %v167_v28, %v171_v29  ;;  %v2153_v28 = vld [vmem:[#allocation8 + $0x28] sm:$0xff]  }
  0x98   :  { %933 = vmatprep.subr.bf16.mxu0 %v1868_v35  ;;  %974 = vmatprep.subr.bf16.mxu1 %v1870_v38  ;;  %v1934_v35 = vcombine.high %v168_v30, %v172_v31  ;;  %v176_v38 = vld [vmem:[#allocation5 + $0x318] sm:$0xff]  ;;  %v1933_v41 = vcombine.low %v168_v30, %v172_v31  ;;  %v2154_v29 = vld [vmem:[#allocation8 + $0xa8] sm:$0xff]  }
  0x99   :  { %v2155_v30 = vld [vmem:[#allocation8 + $0x70] sm:$0xff]  }
  0x9a   :  { %v2156_v31 = vld [vmem:[#allocation8 + $0xf0] sm:$0xff]  }
  0x9b   :  { %934 = vmatpush1.bf16.msra.mxu0 %v1867_v39  ;;  %975 = vmatpush1.bf16.msra.mxu1 %v1869_v42  ;;  %v180_v39 = vld [vmem:[#allocation5 + $0x338] sm:$0xff]  ;;  %v1940_v42 = vcombine.high %v175_v36, %v179_v37  ;;  %v2161_v36 = vld [vmem:[#allocation8 + $0x38] sm:$0xff]  }
  0x9c   :  { %935 = vmatprep.subr.bf16.mxu0 %v1876_v57  ;;  %976 = vmatprep.subr.bf16.mxu1 %v1878_v45  ;;  %v1942_v57 = vcombine.high %v176_v38, %v180_v39  ;;  %v184_v45 = vld [vmem:[#allocation5 + $0x358] sm:$0xff]  ;;  %v1941_v48 = vcombine.low %v176_v38, %v180_v39  ;;  %v2162_v37 = vld [vmem:[#allocation8 + $0xb8] sm:$0xff]   ;;  %v2163_v38 = vld [vmem:[#allocation8 + $0x140] sm:$0xff]  }
  0x9d   :  { %v2164_v39 = vld [vmem:[#allocation8 + $0x1c0] sm:$0xff]  }
  0x9f   :  { %936 = vmatpush1.bf16.msra.mxu0 %v1875_v46  ;;  %977 = vmatpush1.bf16.msra.mxu1 %v1877_v49  ;;  %v188_v46 = vld [vmem:[#allocation5 + $0x378] sm:$0xff]  ;;  %v1948_v49 = vcombine.high %v183_v43, %v187_v44 }
  0xa0   :  { %937 = vmatprep.subr.bf16.mxu0 %v1884_v50  ;;  %978 = vmatprep.subr.bf16.mxu1 %v1886_v53  ;;  %v1950_v50 = vcombine.high %v184_v45, %v188_v46  ;;  %v192_v53 = vld [vmem:[#allocation5 + $0x398] sm:$0xff]  ;;  %v1949_v56 = vcombine.low %v184_v45, %v188_v46  ;;  %v2417_v45 = vld [vmem:[#allocation7] sm:$0xff] }
  0xa3   :  { %938 = vmatpush1.bf16.msra.mxu0 %v1883_v54  ;;  %979 = vmatpush1.bf16.msra.mxu1 %v1885_v58  ;;  %v196_v54 = vld [vmem:[#allocation5 + $0x3b8] sm:$0xff]  ;;  %v1956_v58 = vcombine.high %v191_v51, %v195_v52 }
  0xa4   :  { %939 = vmatprep.subr.bf16.mxu0 %v1892_v59  ;;  %980 = vmatprep.subr.bf16.mxu1 %v1894_v62  ;;  %v1958_v59 = vcombine.high %v192_v53, %v196_v54  ;;  %v200_v62 = vld [vmem:[#allocation5 + $0x3d8] sm:$0xff]  ;;  %v1957_v1 = vcombine.low %v192_v53, %v196_v54 }
  0xa7   :  { %940 = vmatpush1.bf16.msra.mxu0 %v1891_v63  ;;  %981 = vmatpush1.bf16.msra.mxu1 %v1893_v2  ;;  %v204_v63 = vld [vmem:[#allocation5 + $0x3f8] sm:$0xff]  ;;  %v1964_v2 = vcombine.high %v199_v60, %v203_v61 }
  0xa8   :  { %941 = vmatprep.subr.bf16.mxu0 %v1900_v3  ;;  %982 = vmatprep.subr.bf16.mxu1 %v1902_v6  ;;  %v1966_v3 = vcombine.high %v200_v62, %v204_v63  ;;  %v1965_v5 = vcombine.low %v200_v62, %v204_v63  ;;  %v2131_v6 = vld [vmem:[#allocation8 + $0x40] sm:$0xff]  }
  0xab   :  { %942 = vmatpush1.bf16.msra.mxu0 %v1899_v7  ;;  %983 = vmatpush1.bf16.msra.mxu1 %v1901_v8  ;;  %v2132_v7 = vld [vmem:[#allocation8 + $0xc0] sm:$0xff]  }
  0xac   :  { %943 = vmatprep.subr.bf16.mxu0 %v1908_v9  ;;  %984 = vmatprep.subr.bf16.mxu1 %v1910_v10  ;;  %v2133_v8 = vld [vmem:[#allocation8] sm:$0xff]   ;;  %v2135_v10 = vld [vmem:[#allocation8 + $0x48] sm:$0xff]  }
  0xad   :  { %v2134_v9 = vld [vmem:[#allocation8 + $0x80] sm:$0xff]  }
  0xaf   :  { %944 = vmatpush1.bf16.msra.mxu0 %v1907_v16  ;;  %985 = vmatpush1.bf16.msra.mxu1 %v1909_v17  ;;  %v2140_v16 = vld [vmem:[#allocation8 + $0xd0] sm:$0xff]  }
  0xb0   :  { %945 = vmatprep.subr.bf16.mxu0 %v1916_v18  ;;  %986 = vmatprep.subr.bf16.mxu1 %v1918_v19  ;;  %v2141_v17 = vld [vmem:[#allocation8 + $0x10] sm:$0xff]   ;;  %v2143_v19 = vld [vmem:[#allocation8 + $0x58] sm:$0xff]  }
  0xb1   :  { %v2142_v18 = vld [vmem:[#allocation8 + $0x90] sm:$0xff]  }
  0xb3   :  { %946 = vmatpush1.bf16.msra.mxu0 %v1915_v24  ;;  %987 = vmatpush1.bf16.msra.mxu1 %v1917_v25  ;;  %v2149_v24 = vld [vmem:[#allocation8 + $0x20] sm:$0xff]  }
  0xb4   :  { %947 = vmatprep.subr.bf16.mxu0 %v1924_v26  ;;  %988 = vmatprep.subr.bf16.mxu1 %v1926_v27  ;;  %v2150_v25 = vld [vmem:[#allocation8 + $0xa0] sm:$0xff]   ;;  %v2151_v26 = vld [vmem:[#allocation8 + $0x68] sm:$0xff]  }
  0xb5   :  { %v2152_v27 = vld [vmem:[#allocation8 + $0xe8] sm:$0xff]  }
  0xb7   :  { %948 = vmatpush1.bf16.msra.mxu0 %v1923_v32  ;;  %989 = vmatpush1.bf16.msra.mxu1 %v1925_v33  ;;  %v2157_v32 = vld [vmem:[#allocation8 + $0x30] sm:$0xff]  }
  0xb8   :  { %949 = vmatprep.subr.bf16.mxu0 %v1932_v34  ;;  %990 = vmatprep.subr.bf16.mxu1 %v1934_v35  ;;  %v2158_v33 = vld [vmem:[#allocation8 + $0xb0] sm:$0xff]   ;;  %v2159_v34 = vld [vmem:[#allocation8 + $0x78] sm:$0xff]  }
  0xb9   :  { %v2160_v35 = vld [vmem:[#allocation8 + $0xf8] sm:$0xff]  }
  0xbb   :  { %950 = vmatpush1.bf16.msra.mxu0 %v1931_v40  ;;  %991 = vmatpush1.bf16.msra.mxu1 %v1933_v41  ;;  %v2322_v40 = vmov 1966171168  }
  0xbc   :  { %951 = vmatprep.subr.bf16.mxu0 %v1940_v42  ;;  %992 = vmatprep.subr.bf16.mxu1 %v1942_v57  ;;  %v1021_v41 = vunpack.c.l.s4 %v2322_v40  ;;  %v1023_v42 = vlaneseq  ;;  %v2186_v40 = vld [vmem:[#allocation8 + $0x1a8] sm:$0xff]  }
  0xbe   :  { %v1022_v57 = vunpack.c.0.s8 %v1021_v41  ;;  %v1024_v43 = vshrl.u32 %v1023_v42, 7  ;;  %v2188_v41 = vld [vmem:[#allocation8 + $0x170] sm:$0xff]  }
  0xbf   :  { %952 = vmatpush1.bf16.msra.mxu0 %v1939_v47  ;;  %993 = vmatpush1.bf16.msra.mxu1 %v1941_v48  ;;  %v2189_v42 = vld [vmem:[#allocation8 + $0x1f0] sm:$0xff]  }
  0xc0   :  { %953 = vmatprep.subr.bf16.mxu0 %v1948_v49  ;;  %994 = vmatprep.subr.bf16.mxu1 %v1950_v50  ;;  %v2415_v44 = vsub.s32 %v1022_v57, %v1024_v43  ;;  %v2423_v53 = vsub.s32 0, %v1024_v43  ;;  %v2190_v57 = vld [vmem:[#allocation8 + $0x130] sm:$0xff]  }
  0xc1   :  { %v2191_v43 = vld [vmem:[#allocation8 + $0x1b0] sm:$0xff]  }
  0xc2   :  { %v1026_v46 = vrot.slane %v2417_v45, %v2415_v44 }
  0xc3   :  { %954 = vmatpush1.bf16.msra.mxu0 %v1947_v55  ;;  %995 = vmatpush1.bf16.msra.mxu1 %v1949_v56 }
  0xc4   :  { %955 = vmatprep.subr.bf16.mxu0 %v1956_v58  ;;  %996 = vmatprep.subr.bf16.mxu1 %v1958_v59  ;;  %v1034_v47 = vcombine.high %v1026_v46, %v1026_v46  ;;  %v1042_v48 = vrot.slane %v1026_v46, %v2415_v44  ;;  %v2192_v46 = vld [vmem:[#allocation8 + $0x178] sm:$0xff]  }
  0xc6   :  { %v1056_v49 = vrot.slane %v1034_v47, %v2415_v44  ;;  %v1064_v50 = vcombine.high %v1042_v48, %v1042_v48  ;;  %v1069_v52 = vpack.i.b16 %v1042_v48, %v1042_v48  ;;  %v2193_v47 = vld [vmem:[#allocation8 + $0x1f8] sm:$0xff]  }
  0xc7   :  { %956 = vmatpush1.bf16.msra.mxu0 %v1955_v0  ;;  %997 = vmatpush1.bf16.msra.mxu1 %v1957_v1  ;;  %v2194_v48 = vld [vmem:[#allocation8 + $0x138] sm:$0xff]  }
  0xc8   :  { %957 = vmatprep.subr.bf16.mxu0 %v1964_v2  ;;  %998 = vmatprep.subr.bf16.mxu1 %v1966_v3  ;;  %v1066_v51 = vcombine.high %v1056_v49, %v1056_v49  ;;  %v1083_v54 = vpack.i.b16 %v1064_v50, %v1064_v50  ;;  %v1076_v55 = vpack.i.b16 %v1056_v49, %v1056_v49  ;;  %v2195_v49 = vld [vmem:[#allocation8 + $0x1b8] sm:$0xff]  }
  0xc9   :  { %v1074_v58 = vrot.slane %v1069_v52, %v2423_v53  ;;  %v1019_v50 = vcombine.high %v2417_v45, %v2417_v45 }
  0xca   :  { %v1090_v56 = vpack.i.b16 %v1066_v51, %v1066_v51  ;;  %v1088_v60 = vrot.slane %v1083_v54, %v2423_v53  ;;  %v1081_v61 = vrot.slane %v1076_v55, %v2423_v53 }
  0xcb   :  { %958 = vmatpush1.bf16.msra.mxu0 %v1963_v4  ;;  %999 = vmatpush1.bf16.msra.mxu1 %v1965_v5  ;;  %v1033_v51 = vrot.slane %v1019_v50, %v2415_v44 }
  0xcc   :  { %2032 = vmatprep.subr.bf16.mxu0 %v2131_v6  ;;  %2054 = vmatprep.subr.bf16.mxu1 %v2132_v7  ;;  %v1095_v1 = vrot.slane %v1090_v56, %v2423_v53 }
  0xcd   :  { %v1035_v52 = vcombine.high %v1033_v51, %v1033_v51  ;;  %v1049_v54 = vrot.slane %v1033_v51, %v2415_v44 }
  0xce   :  { %960 = vmatmul.mubr.bf16.vlgmr.msra.gmra.mrb[4].mxu0 %v2407_v13  ;;  %1001 = vmatmul.mubr.bf16.vlgmr.msra.gmra.mrb[4].mxu1 %v2407_v13  ;;  %v2146_v13 = vld [vmem:[#allocation8 + $0x98] sm:$0xff]  }
  0xcf   :  { %2033 = vmatpush3.bf16.msra.mxu0 %v2133_v8  ;;  %2055 = vmatpush3.bf16.msra.mxu1 %v2134_v9  ;;  %v1063_v55 = vrot.slane %v1035_v52, %v2415_v44  ;;  %v1065_v56 = vcombine.high %v1049_v54, %v1049_v54 }
  0xd0   :  { %2034 = vmatprep.subr.bf16.mxu0 %v2135_v10  ;;  %2056 = vmatprep.subr.bf16.mxu1 %v2136_v11 }
  0xd3   :  { %2035 = vmatpush3.bf16.msra.mxu0 %v2137_v12  ;;  %2057 = vmatpush3.bf16.msra.mxu1 %v2138_v14  ;;  %v2323_v14 = vmov 0  }
  0xd4   :  { %2036 = vmatprep.subr.bf16.mxu0 %v2139_v15  ;;  %2058 = vmatprep.subr.bf16.mxu1 %v2140_v16 }
  0xd7   :  { %2037 = vmatpush3.bf16.msra.mxu0 %v2141_v17  ;;  %2059 = vmatpush3.bf16.msra.mxu1 %v2142_v18 }
  0xd8   :  { %2038 = vmatprep.subr.bf16.mxu0 %v2143_v19  ;;  %2060 = vmatprep.subr.bf16.mxu1 %v2144_v20  ;;  %v2165_v19 = vld [vmem:[#allocation8 + $0x100] sm:$0xff]  }
  0xdb   :  { %2039 = vmatpush3.bf16.msra.mxu0 %v2145_v21  ;;  %2061 = vmatpush3.bf16.msra.mxu1 %v2146_v13  ;;  %v2166_v21 = vld [vmem:[#allocation8 + $0x180] sm:$0xff]   ;;  %v2167_v13 = vld [vmem:[#allocation8 + $0x148] sm:$0xff]  }
  0xdc   :  { %2040 = vmatprep.subr.bf16.mxu0 %v2147_v22  ;;  %2062 = vmatprep.subr.bf16.mxu1 %v2148_v23  ;;  %v2168_v22 = vld [vmem:[#allocation8 + $0x1c8] sm:$0xff]  }
  0xdd   :  { %v2169_v23 = vld [vmem:[#allocation8 + $0x108] sm:$0xff]  }
  0xdf   :  { %2041 = vmatpush3.bf16.msra.mxu0 %v2149_v24  ;;  %2063 = vmatpush3.bf16.msra.mxu1 %v2150_v25  ;;  %v2170_v24 = vld [vmem:[#allocation8 + $0x188] sm:$0xff]   ;;  %v2171_v25 = vld [vmem:[#allocation8 + $0x150] sm:$0xff]  }
  0xe0   :  { %2042 = vmatprep.subr.bf16.mxu0 %v2151_v26  ;;  %2064 = vmatprep.subr.bf16.mxu1 %v2152_v27  ;;  %v2172_v26 = vld [vmem:[#allocation8 + $0x1d0] sm:$0xff]  }
  0xe1   :  { %v2173_v27 = vld [vmem:[#allocation8 + $0x110] sm:$0xff]  }
  0xe3   :  { %2043 = vmatpush3.bf16.msra.mxu0 %v2153_v28  ;;  %2065 = vmatpush3.bf16.msra.mxu1 %v2154_v29  ;;  %v2174_v28 = vld [vmem:[#allocation8 + $0x190] sm:$0xff]   ;;  %v2175_v29 = vld [vmem:[#allocation8 + $0x158] sm:$0xff]  }
  0xe4   :  { %2044 = vmatprep.subr.bf16.mxu0 %v2155_v30  ;;  %2066 = vmatprep.subr.bf16.mxu1 %v2156_v31  ;;  %v2176_v30 = vld [vmem:[#allocation8 + $0x1d8] sm:$0xff]  }
  0xe5   :  { %v2177_v31 = vld [vmem:[#allocation8 + $0x118] sm:$0xff]  }
  0xe7   :  { %2045 = vmatpush3.bf16.msra.mxu0 %v2157_v32  ;;  %2067 = vmatpush3.bf16.msra.mxu1 %v2158_v33  ;;  %v2178_v32 = vld [vmem:[#allocation8 + $0x198] sm:$0xff]   ;;  %v2179_v33 = vld [vmem:[#allocation8 + $0x160] sm:$0xff]  }
  0xe8   :  { %2046 = vmatprep.subr.bf16.mxu0 %v2159_v34  ;;  %2068 = vmatprep.subr.bf16.mxu1 %v2160_v35  ;;  %v2180_v34 = vld [vmem:[#allocation8 + $0x1e0] sm:$0xff]  }
  0xe9   :  { %v2181_v35 = vld [vmem:[#allocation8 + $0x120] sm:$0xff]  }
  0xeb   :  { %2047 = vmatpush3.bf16.msra.mxu0 %v2161_v36  ;;  %2069 = vmatpush3.bf16.msra.mxu1 %v2162_v37  ;;  %v2182_v36 = vld [vmem:[#allocation8 + $0x1a0] sm:$0xff]   ;;  %v2183_v37 = vld [vmem:[#allocation8 + $0x168] sm:$0xff]  }
  0xec   :  { %2076 = vmatprep.subr.bf16.mxu0 %v2163_v38  ;;  %2098 = vmatprep.subr.bf16.mxu1 %v2164_v39  ;;  %v2184_v38 = vld [vmem:[#allocation8 + $0x1e8] sm:$0xff]  }
  0xed   :  { %v2185_v39 = vld [vmem:[#allocation8 + $0x128] sm:$0xff]  }
 0x161   :  { %v879_v59 = vpop.f32.mrb[0].mxu0  ;;  %v920_v63 = vpop.f32.mrb[0].mxu1 }
 0x162   :  { %v1009_v62 = vpack.c.bf16 %v879_v59, %v879_v59  ;;  %v881_v0 = vpop.f32.mrb[1].mxu0  ;;  %v1011_v2 = vpack.c.bf16 %v920_v63, %v920_v63  ;;  %v922_v4 = vpop.f32.mrb[1].mxu1  ;;  %v1097_v59 = vpack.i.b16 %v1049_v54, %v1049_v54 }
 0x163   :  { %v1010_v3 = vpack.c.bf16 %v881_v0, %v881_v0  ;;  %v883_v5 = vpop.f32.mrb[2].mxu0  ;;  %v1012_v7 = vpack.c.bf16 %v922_v4, %v922_v4  ;;  %v924_v8 = vpop.f32.mrb[2].mxu1 }
 0x164   :  { %v1124_v6 = vadd.bf16 %v1074_v58, %v1009_v62  ;;  %v884_v9 = vpop.f32.mrb[3].mxu0  ;;  %v1126_v10 = vadd.bf16 %v1088_v60, %v1011_v2  ;;  %v925_v12 = vpop.f32.mrb[3].mxu1  ;;  %v1067_v58 = vcombine.high %v1063_v55, %v1063_v55  ;;  %v1111_v60 = vpack.i.b16 %v1065_v56, %v1065_v56 }
 0x165   :  { %v1125_v11 = vadd.bf16 %v1081_v61, %v1010_v3  ;;  %v1127_v16 = vadd.bf16 %v1095_v1, %v1012_v7  ;;  %v1104_v61 = vpack.i.b16 %v1063_v55, %v1063_v55  ;;  %v1102_v63 = vrot.slane %v1097_v59, %v2423_v53 }
 0x166   :  { %v1132_v15 = vmax.bf16 %v2323_v14, %v1124_v6  ;;  %v1134_v17 = vmax.bf16 %v2323_v14, %v1126_v10  ;;  %v1118_v62 = vpack.i.b16 %v1067_v58, %v1067_v58  ;;  %v1116_v1 = vrot.slane %v1111_v60, %v2423_v53 }
 0x167   :  { %v1133_v18 = vmax.bf16 %v2323_v14, %v1125_v11  ;;  %v1135_v20 = vmax.bf16 %v2323_v14, %v1127_v16  ;;  %v1109_v45 = vrot.slane %v1104_v61, %v2423_v53 }
 0x168   :  { %v1123_v5 = vrot.slane %v1118_v62, %v2423_v53 }
 0x169   :  { %1684 = vmatprep.mubr.bf16.mxu0 %v1133_v18  ;;  %1724 = vmatprep.mubr.bf16.mxu1 %v1135_v20 }
 0x16a   :  { %1685 = vmatmul.mubr.bf16.vlgmr.msra.gmra.mrb[8].mxu0 %v1132_v15  ;;  %1725 = vmatmul.mubr.bf16.vlgmr.msra.gmra.mrb[8].mxu1 %v1134_v17 }
 0x16b   :  { %2077 = vmatpush3.bf16.msra.mxu0 %v2165_v19  ;;  %2099 = vmatpush3.bf16.msra.mxu1 %v2166_v21 }
 0x16c   :  { %2078 = vmatprep.subr.bf16.mxu0 %v2167_v13  ;;  %2100 = vmatprep.subr.bf16.mxu1 %v2168_v22 }
 0x16f   :  { %2079 = vmatpush3.bf16.msra.mxu0 %v2169_v23  ;;  %2101 = vmatpush3.bf16.msra.mxu1 %v2170_v24 }
 0x170   :  { %2080 = vmatprep.subr.bf16.mxu0 %v2171_v25  ;;  %2102 = vmatprep.subr.bf16.mxu1 %v2172_v26 }
 0x173   :  { %2081 = vmatpush3.bf16.msra.mxu0 %v2173_v27  ;;  %2103 = vmatpush3.bf16.msra.mxu1 %v2174_v28 }
 0x174   :  { %2082 = vmatprep.subr.bf16.mxu0 %v2175_v29  ;;  %2104 = vmatprep.subr.bf16.mxu1 %v2176_v30 }
 0x177   :  { %2083 = vmatpush3.bf16.msra.mxu0 %v2177_v31  ;;  %2105 = vmatpush3.bf16.msra.mxu1 %v2178_v32 }
 0x178   :  { %2084 = vmatprep.subr.bf16.mxu0 %v2179_v33  ;;  %2106 = vmatprep.subr.bf16.mxu1 %v2180_v34 }
 0x17b   :  { %2085 = vmatpush3.bf16.msra.mxu0 %v2181_v35  ;;  %2107 = vmatpush3.bf16.msra.mxu1 %v2182_v36 }
 0x17c   :  { %2086 = vmatprep.subr.bf16.mxu0 %v2183_v37  ;;  %2108 = vmatprep.subr.bf16.mxu1 %v2184_v38 }
 0x17f   :  { %2087 = vmatpush3.bf16.msra.mxu0 %v2185_v39  ;;  %2109 = vmatpush3.bf16.msra.mxu1 %v2186_v40 }
 0x180   :  { %2088 = vmatprep.subr.bf16.mxu0 %v2188_v41  ;;  %2110 = vmatprep.subr.bf16.mxu1 %v2189_v42  ;;  %v2031_v42 = vld [vmem:[%s2465_s4] ss:$0 sm:$0xff] }
 0x183   :  { %2089 = vmatpush3.bf16.msra.mxu0 %v2190_v57  ;;  %2111 = vmatpush3.bf16.msra.mxu1 %v2191_v43 }
 0x184   :  { %2090 = vmatprep.subr.bf16.mxu0 %v2192_v46  ;;  %2112 = vmatprep.subr.bf16.mxu1 %v2193_v47 }
 0x187   :  { %2091 = vmatpush3.bf16.msra.mxu0 %v2194_v48  ;;  %2113 = vmatpush3.bf16.msra.mxu1 %v2195_v49 }
 0x1a1   :  { %v961_v0 = vpop.f32.mrb[4].mxu0  ;;  %v1002_v3 = vpop.f32.mrb[4].mxu1 }
 0x1a2   :  { %v1013_v2 = vpack.c.bf16 %v961_v0, %v961_v0  ;;  %v963_v4 = vpop.f32.mrb[5].mxu0  ;;  %v1015_v6 = vpack.c.bf16 %v1002_v3, %v1002_v3  ;;  %v1004_v7 = vpop.f32.mrb[5].mxu1 }
 0x1a3   :  { %v1014_v44 = vpack.c.bf16 %v963_v4, %v963_v4  ;;  %v965_v8 = vpop.f32.mrb[6].mxu0  ;;  %v1016_v10 = vpack.c.bf16 %v1004_v7, %v1004_v7  ;;  %v1006_v11 = vpop.f32.mrb[6].mxu1 }
 0x1a4   :  { %v1128_v9 = vadd.bf16 %v1102_v63, %v1013_v2  ;;  %v966_v12 = vpop.f32.mrb[7].mxu0  ;;  %v1130_v15 = vadd.bf16 %v1116_v1, %v1015_v6  ;;  %v1007_v17 = vpop.f32.mrb[7].mxu1 }
 0x1a5   :  { %v1129_v16 = vadd.bf16 %v1109_v45, %v1014_v44  ;;  %v1131_v18 = vadd.bf16 %v1123_v5, %v1016_v10 }
 0x1a6   :  { %v1138_v19 = vmax.bf16 %v2323_v14, %v1130_v15  ;;  %v1136_v21 = vmax.bf16 %v2323_v14, %v1128_v9 }
 0x1a7   :  { %v1137_v20 = vmax.bf16 %v2323_v14, %v1129_v16  ;;  %v1139_v53 = vmax.bf16 %v2323_v14, %v1131_v18 }
 0x1a9   :  { %1764 = vmatprep.mubr.bf16.mxu0 %v1137_v20  ;;  %1804 = vmatprep.mubr.bf16.mxu1 %v1139_v53 }
 0x1aa   :  { %1765 = vmatmul.mubr.bf16.vlgmr.msra.gmra.mrb[12].mxu0 %v1136_v21  ;;  %1805 = vmatmul.mubr.bf16.vlgmr.msra.gmra.mrb[12].mxu1 %v1138_v19 }
 0x23d   :  { %v2048_v13 = vpop.f32.mrb[8].mxu0  ;;  %v2070_v22 = vpop.f32.mrb[8].mxu1 }
 0x23e   :  { %v2049_v23 = vpop.f32.mrb[9].mxu0  ;;  %v2071_v25 = vpop.f32.mrb[9].mxu1 }
 0x23f   :  { %v2050_v24 = vadd.f32 %v2049_v23, %v2048_v13  ;;  %v2051_v26 = vpop.f32.mrb[10].mxu0  ;;  %v2072_v27 = vadd.f32 %v2071_v25, %v2070_v22  ;;  %v2073_v28 = vpop.f32.mrb[10].mxu1 }
 0x240   :  { %v2052_v29 = vpop.f32.mrb[11].mxu0  ;;  %v2074_v30 = vpop.f32.mrb[11].mxu1 }
 0x241   :  { %v1727_v31 = vadd.f32 %v2072_v27, %v2050_v24 }
 0x27d   :  { %v2092_v32 = vpop.f32.mrb[12].mxu0  ;;  %v2114_v33 = vpop.f32.mrb[12].mxu1 }
 0x27e   :  { %v2093_v34 = vpop.f32.mrb[13].mxu0  ;;  %v2115_v14 = vpop.f32.mrb[13].mxu1 }
 0x27f   :  { %v2094_v35 = vadd.f32 %v2093_v34, %v2092_v32  ;;  %v2095_v36 = vpop.f32.mrb[14].mxu0  ;;  %v2116_v37 = vadd.f32 %v2115_v14, %v2114_v33  ;;  %v2117_v38 = vpop.f32.mrb[14].mxu1 }
 0x280   :  { %v2096_v39 = vpop.f32.mrb[15].mxu0  ;;  %v2118_v41 = vpop.f32.mrb[15].mxu1 }
 0x281   :  { %v1767_v40 = vadd.f32 %v2094_v35, %v1727_v31 }
 0x283   :  { %v1807_v57 = vadd.f32 %v2116_v37, %v1767_v40 }
 0x285   :  { %v1819_v43 = vadd.f32 %v2031_v42, %v1807_v57 }
 0x287   :  { %1821 = vst.msk [vmem:[#allocation10] sm:$0xff] %vm1820_vm0, %v1819_v43 }
 0x288   :  { %2295 = shalt.err (!%p2292_p8)
}
 0x289   :  { %s2296_s22 = scalar_lea.hbm %s2466_s5, 128 }
 0x28a   :  { %p2297_p9 = scmp.ne.s32.totalorder %s2466_s5, %s2296_s22  ;;  %p2300_p10 = scmp.lt.u32.totalorder %s2296_s22, %s2466_s5 }
 0x28c   :  { %p2302_p11 = pnand %p2300_p10, %p2297_p9 }
 0x28e   :  { %2305 = shalt.err (!%p2302_p11)
}
 0x28f   :  { %1831 = dma.vmem_to_hbm [thread:$0]  %s1829_s18, 128, %s2466_s5, [#allocation4]  }
 0x290   :  { %2312 = dma.done.wait [#allocation4], 128  }
 0x291   :  { %2313 = vsyncadd [#allocation4], 4294967168 }
 0x292   :  { %1835 = vsyncpa [#allocation3], 1 }
 0x293   :  { %1836 = vsyncpa [#allocation6], 1 }
 0x294   :  { %1837 = vsyncpa [#allocation9], 1 }
 0x295   :  { %1838 = vsyncpa [#allocation4], 1 }

</bundles_post_ra>
